<compile_context>
chip_gen: v5e
topology: v5e:2x2
jax: 0.10.0
libtpu: 0.0.40
codegen_flags: <defaults>
</compile_context>

<pallas_src>
import functools

import jax
import jax.numpy as jnp
from jax.experimental import pallas as pl
from jax.experimental.pallas import tpu as pltpu

IN_DIM = 28 * 28          # 784
H1, H2, H3, OUT = 64, 128, 256, 10
H1_PAD, OUT_PAD = 128, 128   # lane-dense padding (multiples of 128)
BLOCK_B = 512                # default batch tile (sweep 256/512/1024; v7x up to 2048)


def _round_up(x, m):
    return ((x + m - 1) // m) * m


def _mlp_kernel(x_ref,
                w1_ref, b1_ref,
                w2_ref, b2_ref,
                w3_ref, b3_ref,
                w4_ref, b4_ref,
                o_ref):
    # x tile arrives as bf16 (cast once in the wrapper); accumulate in f32,
    # bias add / ReLU stay f32 (v5e VPU has no bf16 path).
    x = x_ref[...]

    h = jnp.dot(x, w1_ref[...], preferred_element_type=jnp.float32) + b1_ref[...]
    h = jnp.maximum(h, 0.0)

    h = jnp.dot(h.astype(jnp.bfloat16), w2_ref[...],
                preferred_element_type=jnp.float32) + b2_ref[...]
    h = jnp.maximum(h, 0.0)

    h = jnp.dot(h.astype(jnp.bfloat16), w3_ref[...],
                preferred_element_type=jnp.float32) + b3_ref[...]
    h = jnp.maximum(h, 0.0)

    h = jnp.dot(h.astype(jnp.bfloat16), w4_ref[...],
                preferred_element_type=jnp.float32) + b4_ref[...]

    o_ref[...] = h.astype(o_ref.dtype)


def prepare_params(params):
    """Pad widths to lane-dense multiples of 128 and cast weights to bf16.

    Input params: w_i (in, out) f32, b_i (1, out) f32 (PyTorch weights transposed).
    Zero padding is exact: padded columns get bias 0 -> ReLU(0)=0 -> padded input
    rows of the next weight are zero, so results are bit-identical on the real lanes.
    """
    def pad_w(w, out_pad, in_pad=None):
        i, o = w.shape
        in_pad = i if in_pad is None else in_pad
        return jnp.pad(w, ((0, in_pad - i), (0, out_pad - o))).astype(jnp.bfloat16)

    def pad_b(b, out_pad):
        return jnp.pad(b, ((0, 0), (0, out_pad - b.shape[1]))).astype(jnp.float32)

    return {
        "w1": pad_w(params["w1"], H1_PAD),              # (784, 128) bf16
        "b1": pad_b(params["b1"], H1_PAD),              # (1, 128)  f32
        "w2": pad_w(params["w2"], H2, in_pad=H1_PAD),   # (128, 128) bf16
        "b2": pad_b(params["b2"], H2),
        "w3": pad_w(params["w3"], H3),                  # (128, 256) bf16
        "b3": pad_b(params["b3"], H3),
        "w4": pad_w(params["w4"], OUT_PAD),             # (256, 128) bf16
        "b4": pad_b(params["b4"], OUT_PAD),
    }


@functools.partial(jax.jit, static_argnames=("block_b",))
def mlp_forward(x, prepared, *, block_b=BLOCK_B):
    """x: (B, 784) f32. prepared: output of prepare_params (keep resident on device)."""
    B = x.shape[0]
    # Right-size the tile for small batches (latency path); otherwise use block_b.
    tb = min(block_b, _round_up(B, 8))
    nb = pl.cdiv(B, tb)
    B_pad = nb * tb

    # Single half-width pass over x: f32 -> bf16 cast (fused with batch pad if any).
    x = x.astype(jnp.bfloat16)
    if B_pad != B:
        x = jnp.pad(x, ((0, B_pad - B), (0, 0)))

    p = prepared
    args = (x,
            p["w1"], p["b1"], p["w2"], p["b2"],
            p["w3"], p["b3"], p["w4"], p["b4"])

    def _batch_spec(feat):
        return pl.BlockSpec((tb, feat), lambda i: (i, 0))

    def _resident_spec(shape):
        # Whole array, same block for every grid step -> DMA'd once, stays in VMEM.
        return pl.BlockSpec(shape, lambda i: (0, 0))

    in_specs = [
        _batch_spec(IN_DIM),                 # x (bf16)
        _resident_spec(p["w1"].shape), _resident_spec(p["b1"].shape),
        _resident_spec(p["w2"].shape), _resident_spec(p["b2"].shape),
        _resident_spec(p["w3"].shape), _resident_spec(p["b3"].shape),
        _resident_spec(p["w4"].shape), _resident_spec(p["b4"].shape),
    ]

    flops = 2 * B_pad * (IN_DIM * H1_PAD + H1_PAD * H2 + H2 * H3 + H3 * OUT_PAD)
    weight_bytes = sum(int(p[k].size) * p[k].dtype.itemsize
                       for k in ("w1", "b1", "w2", "b2", "w3", "b3", "w4", "b4"))
    bytes_accessed = B_pad * IN_DIM * 2 + weight_bytes + B_pad * OUT_PAD * 4

    out_pad = pl.pallas_call(
        _mlp_kernel,
        out_shape=jax.ShapeDtypeStruct((B_pad, OUT_PAD), jnp.float32),
        grid_spec=pltpu.PrefetchScalarGridSpec(
            num_scalar_prefetch=0,
            grid=(nb,),
            in_specs=in_specs,
            out_specs=pl.BlockSpec((tb, OUT_PAD), lambda i: (i, 0)),
        ),
        compiler_params=pltpu.CompilerParams(
            dimension_semantics=("parallel",),
            vmem_limit_bytes=32 << 20,   # sized for the 512-row bf16 tile sweep
        ),
        cost_estimate=pl.CostEstimate(flops=flops,
                                      bytes_accessed=bytes_accessed,
                                      transcendentals=0),
    )(*args)

    # Drop batch padding and the zero-padded output lanes.
    return out_pad[:B, :OUT]


def init_params(key):
    """Deterministic init matching PyTorch nn.Linear shapes.
    PyTorch weight is (out, in); we store (in, out) for y = x @ W + b."""
    dims = [IN_DIM, H1, H2, H3, OUT]
    params = {}
    for i, (d_in, d_out) in enumerate(zip(dims[:-1], dims[1:]), start=1):
        key, kw, kb = jax.random.split(key, 3)
        bound = 1.0 / jnp.sqrt(d_in)  # nn.Linear default U(-1/sqrt(in), 1/sqrt(in))
        params[f"w{i}"] = jax.random.uniform(kw, (d_in, d_out), jnp.float32,
                                             minval=-bound, maxval=bound)
        params[f"b{i}"] = jax.random.uniform(kb, (1, d_out), jnp.float32,
                                             minval=-bound, maxval=bound)
    return params


def _reference(x, params, bf16_inputs):
    """Plain-JAX reference with the same numerics (optionally bf16 MXU inputs)."""
    def cast(a):
        return a.astype(jnp.bfloat16) if bf16_inputs else a
    h = x
    for i in range(1, 4):
        h = jnp.dot(cast(h), cast(params[f"w{i}"]),
                    preferred_element_type=jnp.float32) + params[f"b{i}"]
        h = jnp.maximum(h, 0.0)
    return jnp.dot(cast(h), cast(params["w4"]),
                   preferred_element_type=jnp.float32) + params["b4"]


if __name__ == "__main__":
    key = jax.random.PRNGKey(0)
    kp, kx = jax.random.split(key)
    params = init_params(kp)
    prepared = prepare_params(params)   # pre-cast / pre-padded, kept on device

    B = 8
    x = jax.random.normal(kx, (B, IN_DIM), jnp.float32)

    out = mlp_forward(x, prepared)
    out = jax.block_until_ready(out)
    assert out.shape == (B, OUT)

    # Tight check vs. a reference with identical bf16-input / f32-accumulate numerics.
    ref_bf16 = _reference(x, params, bf16_inputs=True)
    assert jnp.allclose(out, ref_bf16, atol=2e-3, rtol=2e-3), (
        float(jnp.max(jnp.abs(out - ref_bf16))))

    # Loose sanity check vs. the pure-f32 PyTorch-equivalent forward.
    ref_f32 = _reference(x, params, bf16_inputs=False)
    assert jnp.allclose(out, ref_f32, atol=5e-2, rtol=5e-2), (
        float(jnp.max(jnp.abs(out - ref_f32))))

    # Also exercise a ragged, larger batch so the big-tile path is covered.
    kx2 = jax.random.split(kx)[0]
    B2 = 1000
    x2 = jax.random.normal(kx2, (B2, IN_DIM), jnp.float32)
    out2 = jax.block_until_ready(mlp_forward(x2, prepared))
    ref2 = _reference(x2, params, bf16_inputs=True)
    assert out2.shape == (B2, OUT)
    assert jnp.allclose(out2, ref2, atol=2e-3, rtol=2e-3), (
        float(jnp.max(jnp.abs(out2 - ref2))))

    print("KERNEL_OK")
</pallas_src>

<mosaic_0001>
module attributes {stable_mosaic.version = 11 : i64} {
  func.func @_mlp_kernel(%arg0: i32, %arg1: memref<8x784xbf16, #tpu.memory_space<vmem>>, %arg2: memref<784x128xbf16, #tpu.memory_space<vmem>>, %arg3: memref<1x128xf32, #tpu.memory_space<vmem>>, %arg4: memref<128x128xbf16, #tpu.memory_space<vmem>>, %arg5: memref<1x128xf32, #tpu.memory_space<vmem>>, %arg6: memref<128x256xbf16, #tpu.memory_space<vmem>>, %arg7: memref<1x256xf32, #tpu.memory_space<vmem>>, %arg8: memref<256x128xbf16, #tpu.memory_space<vmem>>, %arg9: memref<1x128xf32, #tpu.memory_space<vmem>>, %arg10: memref<8x128xf32, #tpu.memory_space<vmem>>) attributes {dimension_semantics = [#tpu.dimension_semantics<parallel>], iteration_bounds = array<i64: 1>, scalar_prefetch = 0 : i64, scratch_operands = 0 : i64, tpu.core_type = #tpu.core_type<tc>, window_params = [{transform_indices = @transform_0, window_bounds = array<i64: 8, 784>}, {pipeline_mode = #tpu.pipeline_mode<synchronous>, transform_indices = @transform_1, window_bounds = array<i64: 784, 128>}, {pipeline_mode = #tpu.pipeline_mode<synchronous>, transform_indices = @transform_2, window_bounds = array<i64: 1, 128>}, {pipeline_mode = #tpu.pipeline_mode<synchronous>, transform_indices = @transform_3, window_bounds = array<i64: 128, 128>}, {pipeline_mode = #tpu.pipeline_mode<synchronous>, transform_indices = @transform_4, window_bounds = array<i64: 1, 128>}, {pipeline_mode = #tpu.pipeline_mode<synchronous>, transform_indices = @transform_5, window_bounds = array<i64: 128, 256>}, {pipeline_mode = #tpu.pipeline_mode<synchronous>, transform_indices = @transform_6, window_bounds = array<i64: 1, 256>}, {pipeline_mode = #tpu.pipeline_mode<synchronous>, transform_indices = @transform_7, window_bounds = array<i64: 256, 128>}, {pipeline_mode = #tpu.pipeline_mode<synchronous>, transform_indices = @transform_8, window_bounds = array<i64: 1, 128>}, {transform_indices = @transform_9, window_bounds = array<i64: 8, 128>}]} {
    %c0 = arith.constant 0 : index
    %c0_0 = arith.constant 0 : index
    %0 = vector.load %arg1[%c0, %c0_0] : memref<8x784xbf16, #tpu.memory_space<vmem>>, vector<8x784xbf16>
    %c0_1 = arith.constant 0 : index
    %c0_2 = arith.constant 0 : index
    %1 = vector.load %arg2[%c0_1, %c0_2] : memref<784x128xbf16, #tpu.memory_space<vmem>>, vector<784x128xbf16>
    %cst = arith.constant dense<0.000000e+00> : vector<8x128xf32>
    %2 = tpu.matmul %0, %1, %cst {dimension_numbers = #tpu.dot_dimension_numbers<[1], [0], [0], [1], [0, 0, 1, 1], [], []>} : vector<8x784xbf16>, vector<784x128xbf16>, vector<8x128xf32> -> vector<8x128xf32>
    %c0_3 = arith.constant 0 : index
    %c0_4 = arith.constant 0 : index
    %3 = vector.load %arg3[%c0_3, %c0_4] : memref<1x128xf32, #tpu.memory_space<vmem>>, vector<1x128xf32>
    %4 = vector.broadcast %3 : vector<1x128xf32> to vector<8x128xf32>
    %5 = arith.addf %2, %4 : vector<8x128xf32>
    %cst_5 = arith.constant 0.000000e+00 : f32
    %6 = vector.broadcast %cst_5 : f32 to vector<8x128xf32>
    %7 = arith.maximumf %5, %6 : vector<8x128xf32>
    %8 = arith.truncf %7 : vector<8x128xf32> to vector<8x128xbf16>
    %c0_6 = arith.constant 0 : index
    %c0_7 = arith.constant 0 : index
    %9 = vector.load %arg4[%c0_6, %c0_7] : memref<128x128xbf16, #tpu.memory_space<vmem>>, vector<128x128xbf16>
    %cst_8 = arith.constant dense<0.000000e+00> : vector<8x128xf32>
    %10 = tpu.matmul %8, %9, %cst_8 {dimension_numbers = #tpu.dot_dimension_numbers<[1], [0], [0], [1], [0, 0, 1, 1], [], []>} : vector<8x128xbf16>, vector<128x128xbf16>, vector<8x128xf32> -> vector<8x128xf32>
    %c0_9 = arith.constant 0 : index
    %c0_10 = arith.constant 0 : index
    %11 = vector.load %arg5[%c0_9, %c0_10] : memref<1x128xf32, #tpu.memory_space<vmem>>, vector<1x128xf32>
    %12 = vector.broadcast %11 : vector<1x128xf32> to vector<8x128xf32>
    %13 = arith.addf %10, %12 : vector<8x128xf32>
    %cst_11 = arith.constant 0.000000e+00 : f32
    %14 = vector.broadcast %cst_11 : f32 to vector<8x128xf32>
    %15 = arith.maximumf %13, %14 : vector<8x128xf32>
    %16 = arith.truncf %15 : vector<8x128xf32> to vector<8x128xbf16>
    %c0_12 = arith.constant 0 : index
    %c0_13 = arith.constant 0 : index
    %17 = vector.load %arg6[%c0_12, %c0_13] : memref<128x256xbf16, #tpu.memory_space<vmem>>, vector<128x256xbf16>
    %cst_14 = arith.constant dense<0.000000e+00> : vector<8x256xf32>
    %18 = tpu.matmul %16, %17, %cst_14 {dimension_numbers = #tpu.dot_dimension_numbers<[1], [0], [0], [1], [0, 0, 1, 1], [], []>} : vector<8x128xbf16>, vector<128x256xbf16>, vector<8x256xf32> -> vector<8x256xf32>
    %c0_15 = arith.constant 0 : index
    %c0_16 = arith.constant 0 : index
    %19 = vector.load %arg7[%c0_15, %c0_16] : memref<1x256xf32, #tpu.memory_space<vmem>>, vector<1x256xf32>
    %20 = vector.broadcast %19 : vector<1x256xf32> to vector<8x256xf32>
    %21 = arith.addf %18, %20 : vector<8x256xf32>
    %cst_17 = arith.constant 0.000000e+00 : f32
    %22 = vector.broadcast %cst_17 : f32 to vector<8x256xf32>
    %23 = arith.maximumf %21, %22 : vector<8x256xf32>
    %24 = arith.truncf %23 : vector<8x256xf32> to vector<8x256xbf16>
    %c0_18 = arith.constant 0 : index
    %c0_19 = arith.constant 0 : index
    %25 = vector.load %arg8[%c0_18, %c0_19] : memref<256x128xbf16, #tpu.memory_space<vmem>>, vector<256x128xbf16>
    %cst_20 = arith.constant dense<0.000000e+00> : vector<8x128xf32>
    %26 = tpu.matmul %24, %25, %cst_20 {dimension_numbers = #tpu.dot_dimension_numbers<[1], [0], [0], [1], [0, 0, 1, 1], [], []>} : vector<8x256xbf16>, vector<256x128xbf16>, vector<8x128xf32> -> vector<8x128xf32>
    %c0_21 = arith.constant 0 : index
    %c0_22 = arith.constant 0 : index
    %27 = vector.load %arg9[%c0_21, %c0_22] : memref<1x128xf32, #tpu.memory_space<vmem>>, vector<1x128xf32>
    %28 = vector.broadcast %27 : vector<1x128xf32> to vector<8x128xf32>
    %29 = arith.addf %26, %28 : vector<8x128xf32>
    %c0_23 = arith.constant 0 : index
    %c0_24 = arith.constant 0 : index
    %30 = vector.load %arg10[%c0_23, %c0_24] : memref<8x128xf32, #tpu.memory_space<vmem>>, vector<8x128xf32>
    tpu.vector_store %arg10[%c0_23, %c0_24], %29 {strides = array<i32>} : memref<8x128xf32, #tpu.memory_space<vmem>>, vector<8x128xf32>,
    return
  }
  func.func @transform_0(%arg0: i32) -> (i32, i32) {
    %c0_i32 = arith.constant 0 : i32
    %c0_i32_0 = arith.constant 0 : i32
    return %arg0, %c0_i32 : i32, i32
  }
  func.func @transform_1(%arg0: i32) -> (i32, i32) {
    %c0_i32 = arith.constant 0 : i32
    %c0_i32_0 = arith.constant 0 : i32
    %c0_i32_1 = arith.constant 0 : i32
    return %c0_i32, %c0_i32_0 : i32, i32
  }
  func.func @transform_2(%arg0: i32) -> (i32, i32) {
    %c0_i32 = arith.constant 0 : i32
    %c0_i32_0 = arith.constant 0 : i32
    %c0_i32_1 = arith.constant 0 : i32
    return %c0_i32, %c0_i32_0 : i32, i32
  }
  func.func @transform_3(%arg0: i32) -> (i32, i32) {
    %c0_i32 = arith.constant 0 : i32
    %c0_i32_0 = arith.constant 0 : i32
    %c0_i32_1 = arith.constant 0 : i32
    return %c0_i32, %c0_i32_0 : i32, i32
  }
  func.func @transform_4(%arg0: i32) -> (i32, i32) {
    %c0_i32 = arith.constant 0 : i32
    %c0_i32_0 = arith.constant 0 : i32
    %c0_i32_1 = arith.constant 0 : i32
    return %c0_i32, %c0_i32_0 : i32, i32
  }
  func.func @transform_5(%arg0: i32) -> (i32, i32) {
    %c0_i32 = arith.constant 0 : i32
    %c0_i32_0 = arith.constant 0 : i32
    %c0_i32_1 = arith.constant 0 : i32
    return %c0_i32, %c0_i32_0 : i32, i32
  }
  func.func @transform_6(%arg0: i32) -> (i32, i32) {
    %c0_i32 = arith.constant 0 : i32
    %c0_i32_0 = arith.constant 0 : i32
    %c0_i32_1 = arith.constant 0 : i32
    return %c0_i32, %c0_i32_0 : i32, i32
  }
  func.func @transform_7(%arg0: i32) -> (i32, i32) {
    %c0_i32 = arith.constant 0 : i32
    %c0_i32_0 = arith.constant 0 : i32
    %c0_i32_1 = arith.constant 0 : i32
    return %c0_i32, %c0_i32_0 : i32, i32
  }
  func.func @transform_8(%arg0: i32) -> (i32, i32) {
    %c0_i32 = arith.constant 0 : i32
    %c0_i32_0 = arith.constant 0 : i32
    %c0_i32_1 = arith.constant 0 : i32
    return %c0_i32, %c0_i32_0 : i32, i32
  }
  func.func @transform_9(%arg0: i32) -> (i32, i32) {
    %c0_i32 = arith.constant 0 : i32
    %c0_i32_0 = arith.constant 0 : i32
    return %arg0, %c0_i32 : i32, i32
  }
}

</mosaic_0001>

<bundles_post_ra>
// kernel: mlp_forward.1
= control target key start
LH: loop header
LB: loop body
LE: loop exit
PB: predicated region body
PF: predicated region fallthrough
CT: control target
= control target key end

     0   :  { %14 = vsyncpa [#allocation3], 0  ;;  %s1671_s0 = inlined_call_operand.vmem [shape: bf16[8,784], index: 0, kind: input, shape index: {}]   ;;  %s1672_s1 = inlined_call_operand.hbm [shape: bf16[784,128], index: 1, kind: input, shape index: {}]   ;;  %s1673_s2 = inlined_call_operand.vmem [shape: f32[1,128], index: 2, kind: input, shape index: {}]   ;;  %s1674_s3 = inlined_call_operand.vmem [shape: bf16[128,128], index: 3, kind: input, shape index: {}]   ;;  %s1675_s4 = inlined_call_operand.vmem [shape: f32[1,128], index: 4, kind: input, shape index: {}]   ;;  %s1676_s5 = inlined_call_operand.hbm [shape: bf16[128,256], index: 5, kind: input, shape index: {}]   ;;  %s1677_s6 = inlined_call_operand.vmem [shape: f32[1,256], index: 6, kind: input, shape index: {}]   ;;  %s1678_s7 = inlined_call_operand.hbm [shape: bf16[256,128], index: 7, kind: input, shape index: {}]   ;;  %s1679_s8 = inlined_call_operand.vmem [shape: f32[1,128], index: 8, kind: input, shape index: {}]   ;;  %s1680_s9 = inlined_call_operand.hbm [shape: f32[8,128], index: 9, kind: output, shape index: {}]  }
   0x1   :  { %15 = vsyncpa [#allocation6], 0  ;;  %s42_s11 = sshll.u32 %s1676_s5, 4  ;;  %s43_s11 = int_to_ptr.hbm [resolvable:$true] %s42_s11 }
   0x2   :  { %16 = vsyncpa [#allocation4], 0  ;;  %s1553_s12 = smov [#allocation5]   ;;  %s23_s16 = sshll.u32 %s1672_s1, 4  ;;  %s24_s16 = int_to_ptr.hbm [resolvable:$true] %s23_s16 }
   0x3   :  { %s44_s13 = sshll.u32 %s1553_s12, 4  ;;  %s1554_s17 = smov 128   ;;  %s45_s13 = int_to_ptr.vmem [resolvable:$true] %s44_s13 }
   0x4   :  { %s1555_s18 = smov 8   ;;  %s1556_s19 = smov [#allocation2]  }
   0x5   :  { %50 = dma.hbm_to_vmem [thread:$0]  %s43_s11, 2048, %s45_s13, [#allocation6], %s1554_s17, %s1554_s17, %s1555_s18  }
   0x6   :  { %s25_s20 = sshll.u32 %s1556_s19, 4  ;;  %s1557_s21 = smov 64   ;;  %s26_s20 = int_to_ptr.vmem [resolvable:$true] %s25_s20 }
   0x7   :  { %s1558_s22 = smov 4   ;;  %s57_s24 = sshll.u32 %s1678_s7, 4  ;;  %s58_s24 = int_to_ptr.hbm [resolvable:$true] %s57_s24 }
   0x8   :  { %31 = dma.hbm_to_vmem [thread:$0]  %s24_s16, 6272, %s26_s20, [#allocation3], %s1557_s21, %s1557_s21, %s1558_s22  }
   0x9   :  { %s1559_s25 = smov [#allocation7]  }
   0xa   :  { %s59_s26 = sshll.u32 %s1559_s25, 4  ;;  %s60_s26 = int_to_ptr.vmem [resolvable:$true] %s59_s26 }
   0xb   :  { %65 = dma.hbm_to_vmem [thread:$0]  %s58_s24, 2048, %s60_s26, [#allocation6], %s1557_s21, %s1557_s21, %s1558_s22  }
   0xc   :  { %1547 = dma.done.wait [#allocation3], 6272  }
   0xd   :  { %1548 = vsyncadd [#allocation3], 4294961024 }
   0xe   :  { %1549 = dma.done.wait [#allocation6], 4096  }
   0xf   :  { %1550 = vsyncadd [#allocation6], 4294963200  ;;  %v1358_v0 = vld [vmem:[#allocation2 + $0x38] sm:$0xff]  ;;  %v1357_v3 = vld [vmem:[#allocation2 + $0x30] sm:$0xff]  ;;  %vm505_vm0 = vcmask 130048   ;;  %s983_s11 = sshll.u32 %s1680_s9, 4  ;;  %s984_s11 = int_to_ptr.hbm [resolvable:$true] %s983_s11 }
  0x10   :  { %v1366_v1 = vld [vmem:[#allocation2 + $0x78] sm:$0xff]  ;;  %509 = vmatpush.bf16.msra.mxu0 %v1358_v0  ;;  %v1365_v4 = vld [vmem:[#allocation2 + $0x70] sm:$0xff]  ;;  %v1356_v8 = vld [vmem:[#allocation2 + $0x28] sm:$0xff] }
  0x11   :  { %v1374_v2 = vld [vmem:[#allocation2 + $0xb8] sm:$0xff]  ;;  %522 = vmatpush.bf16.msra.mxu1 %v1366_v1  ;;  %v1373_v5 = vld [vmem:[#allocation2 + $0xb0] sm:$0xff]  ;;  %v1364_v9 = vld [vmem:[#allocation2 + $0x68] sm:$0xff] }
  0x12   :  { %535 = vmatpush.bf16.msra.mxu2 %v1374_v2  ;;  %v1382_v6 = vld [vmem:[#allocation2 + $0xf8] sm:$0xff]  ;;  %v1381_v7 = vld [vmem:[#allocation2 + $0xf0] sm:$0xff]  ;;  %v1372_v10 = vld [vmem:[#allocation2 + $0xa8] sm:$0xff] }
  0x13   :  { %548 = vmatpush.bf16.msra.mxu3 %v1382_v6  ;;  %v1380_v11 = vld [vmem:[#allocation2 + $0xe8] sm:$0xff]  ;;  %v1355_v12 = vld [vmem:[#allocation2 + $0x20] sm:$0xff]  ;;  %v1354_v16 = vld [vmem:[#allocation2 + $0x18] sm:$0xff] }
  0x14   :  { %510 = vmatpush.bf16.msra.mxu0 %v1357_v3  ;;  %v1363_v13 = vld [vmem:[#allocation2 + $0x60] sm:$0xff]  ;;  %v1362_v17 = vld [vmem:[#allocation2 + $0x58] sm:$0xff]  ;;  %v1353_v20 = vld [vmem:[#allocation2 + $0x10] sm:$0xff] }
  0x15   :  { %523 = vmatpush.bf16.msra.mxu1 %v1365_v4  ;;  %v1371_v14 = vld [vmem:[#allocation2 + $0xa0] sm:$0xff]  ;;  %v1370_v18 = vld [vmem:[#allocation2 + $0x98] sm:$0xff]  ;;  %v1361_v21 = vld [vmem:[#allocation2 + $0x50] sm:$0xff] }
  0x16   :  { %536 = vmatpush.bf16.msra.mxu2 %v1373_v5  ;;  %v1379_v15 = vld [vmem:[#allocation2 + $0xe0] sm:$0xff]  ;;  %v1378_v19 = vld [vmem:[#allocation2 + $0xd8] sm:$0xff]  ;;  %v1369_v22 = vld [vmem:[#allocation2 + $0x90] sm:$0xff] }
  0x17   :  { %549 = vmatpush.bf16.msra.mxu3 %v1381_v7  ;;  %v1377_v23 = vld [vmem:[#allocation2 + $0xd0] sm:$0xff]  ;;  %v1352_v24 = vld [vmem:[#allocation2 + $0x8] sm:$0xff]  ;;  %v81_v26 = vld [vmem:[%s1671_s0] sm:$0xff] }
  0x18   :  { %511 = vmatpush.bf16.msra.mxu0 %v1356_v8  ;;  %v1360_v25 = vld [vmem:[#allocation2 + $0x48] sm:$0xff]  ;;  %v191_v29 = vunpack.c.l.b16 %v81_v26  ;;  %v192_v31 = vunpack.c.h.b16 %v81_v26  ;;  %v1351_v32 = vld [vmem:[#allocation2] sm:$0xff]  ;;  %v1390_v34 = vld [vmem:[#allocation2 + $0x138] sm:$0xff] }
  0x19   :  { %524 = vmatpush.bf16.msra.mxu1 %v1364_v9  ;;  %v1368_v27 = vld [vmem:[#allocation2 + $0x88] sm:$0xff]  ;;  %v1359_v33 = vld [vmem:[#allocation2 + $0x40] sm:$0xff]  ;;  %v1398_v35 = vld [vmem:[#allocation2 + $0x178] sm:$0xff] }
  0x1a   :  { %537 = vmatpush.bf16.msra.mxu2 %v1372_v10  ;;  %v82_v28 = vld [vmem:[%s1671_s0 + $0x8] sm:$0xff]  ;;  %v1367_v36 = vld [vmem:[#allocation2 + $0x80] sm:$0xff]  ;;  %v198_v38 = vpack.c.b16 %v191_v29, %v191_v29  ;;  %v199_v39 = vpack.c.b16 %v192_v31, %v192_v31  ;;  %v1389_v43 = vld [vmem:[#allocation2 + $0x130] sm:$0xff] }
  0x1b   :  { %550 = vmatpush.bf16.msra.mxu3 %v1380_v11  ;;  %v1376_v30 = vld [vmem:[#allocation2 + $0xc8] sm:$0xff]  ;;  %v193_v37 = vunpack.c.l.b16 %v82_v28  ;;  %v194_v40 = vunpack.c.h.b16 %v82_v28  ;;  %v1375_v41 = vld [vmem:[#allocation2 + $0xc0] sm:$0xff]  ;;  %v1397_v44 = vld [vmem:[#allocation2 + $0x170] sm:$0xff] }
  0x1c   :  { %512 = vmatpush.bf16.msra.mxu0 %v1355_v12  ;;  %v1399_v42 = vld [vmem:[#allocation2 + $0x180] sm:$0xff]  ;;  %v1388_v47 = vld [vmem:[#allocation2 + $0x128] sm:$0xff]  ;;  %v84_v51 = vld [vmem:[%s1671_s0 + $0x18] sm:$0xf] }
  0x1d   :  { %525 = vmatpush.bf16.msra.mxu1 %v1363_v13  ;;  %v200_v45 = vpack.c.b16 %v193_v37, %v193_v37  ;;  %v201_v46 = vpack.c.b16 %v194_v40, %v194_v40  ;;  %v1396_v48 = vld [vmem:[#allocation2 + $0x168] sm:$0xff]  ;;  %v1387_v49 = vld [vmem:[#allocation2 + $0x120] sm:$0xff]  ;;  %v1386_v52 = vld [vmem:[#allocation2 + $0x118] sm:$0xff]  ;;  %v197_v54 = vunpack.c.l.b16 %v84_v51 }
  0x1e   :  { %538 = vmatpush.bf16.msra.mxu2 %v1371_v14  ;;  %v1395_v50 = vld [vmem:[#allocation2 + $0x160] sm:$0xff]  ;;  %v1394_v53 = vld [vmem:[#allocation2 + $0x158] sm:$0xff]  ;;  %v1385_v55 = vld [vmem:[#allocation2 + $0x110] sm:$0xff] }
  0x1f   :  { %551 = vmatpush.bf16.msra.mxu3 %v1379_v15  ;;  %v1393_v56 = vld [vmem:[#allocation2 + $0x150] sm:$0xff]  ;;  %v204_v57 = vpack.c.b16 %v197_v54, %v197_v54  ;;  %v1384_v58 = vld [vmem:[#allocation2 + $0x108] sm:$0xff]  ;;  %v1383_v63 = vld [vmem:[#allocation2 + $0x100] sm:$0xff] }
  0x20   :  { %513 = vmatpush.bf16.msra.mxu0 %v1354_v16  ;;  %v1392_v59 = vld [vmem:[#allocation2 + $0x148] sm:$0xff]  ;;  %v83_v60 = vld [vmem:[%s1671_s0 + $0x10] sm:$0xff]  ;;  %v1391_v0 = vld [vmem:[#allocation2 + $0x140] sm:$0xff] }
  0x21   :  { %526 = vmatpush.bf16.msra.mxu1 %v1362_v17  ;;  %v195_v61 = vunpack.c.l.b16 %v83_v60  ;;  %v196_v62 = vunpack.c.h.b16 %v83_v60  ;;  %v1407_v3 = vld [vmem:[%s1674_s3 + $0x38] sm:$0xff]  ;;  %v1406_v4 = vld [vmem:[%s1674_s3 + $0x30] sm:$0xff]  ;;  %v1405_v5 = vld [vmem:[%s1674_s3 + $0x28] sm:$0xff] }
  0x22   :  { %539 = vmatpush.bf16.msra.mxu2 %v1370_v18  ;;  %v1404_v6 = vld [vmem:[%s1674_s3 + $0x20] sm:$0xff]  ;;  %v1403_v7 = vld [vmem:[%s1674_s3 + $0x18] sm:$0xff]  ;;  %v1402_v8 = vld [vmem:[%s1674_s3 + $0x10] sm:$0xff] }
  0x23   :  { %552 = vmatpush.bf16.msra.mxu3 %v1378_v19  ;;  %v202_v1 = vpack.c.b16 %v195_v61, %v195_v61  ;;  %v203_v2 = vpack.c.b16 %v196_v62, %v196_v62  ;;  %v1401_v9 = vld [vmem:[%s1674_s3 + $0x8] sm:$0xff]  ;;  %v1400_v12 = vld [vmem:[%s1674_s3] sm:$0xff]  ;;  %v1281_v15 = vld [vmem:[#allocation5 + $0x70] sm:$0xf] }
  0x24   :  { %514 = vmatpush.bf16.msra.mxu0 %v1353_v20  ;;  %v1423_v16 = vld [vmem:[#allocation5 + $0x74] sm:$0xf0]  ;;  %v1422_v17 = vld [vmem:[#allocation5 + $0x74] sm:$0xf]  ;;  %v1283_v20 = vld [vmem:[#allocation5 + $0x78] sm:$0xf0] }
  0x25   :  { %527 = vmatpush.bf16.msra.mxu1 %v1361_v21  ;;  %v1282_v19 = vor.u32 %v1423_v16, %v1281_v15  ;;  %v1273_v21 = vld [vmem:[#allocation5 + $0x60] sm:$0xf]  ;;  %v1275_v26 = vld [vmem:[#allocation5 + $0x68] sm:$0xf0]  ;;  %v1448_v28 = vld [vmem:[%s1673_s2] ss:$0 sm:$0xff] }
  0x26   :  { %540 = vmatpush.bf16.msra.mxu2 %v1369_v22  ;;  %v1421_v22 = vld [vmem:[#allocation5 + $0x64] sm:$0xf0]  ;;  %v1419_v31 = vld [vmem:[#allocation5 + $0x54] sm:$0xf0]  ;;  %v1257_v37 = vld [vmem:[#allocation5 + $0x40] sm:$0xf] }
  0x27   :  { %553 = vmatpush.bf16.msra.mxu3 %v1377_v23  ;;  %v1416_v40 = vld [vmem:[#allocation5 + $0x44] sm:$0xf]  ;;  %v1413_v54 = vld [vmem:[#allocation5 + $0x24] sm:$0xf0] }
  0x28   :  { %515 = vmatpush.bf16.msra.mxu0 %v1352_v24  ;;  %v1286_v24 = vor.u32 %v1422_v17, %v1283_v20  ;;  %v1408_v15 = vld [vmem:[#allocation5 + $0x4] sm:$0xf]  ;;  %v1227_v17 = vld [vmem:[#allocation5 + $0x8] sm:$0xf0]  ;;  %v1431_v20 = vld [vmem:[#allocation7 + $0x38] sm:$0xff] }
  0x29   :  { %528 = vmatpush.bf16.msra.mxu1 %v1360_v25  ;;  %v1420_v25 = vld [vmem:[#allocation5 + $0x64] sm:$0xf] }
  0x2a   :  { %541 = vmatpush.bf16.msra.mxu2 %v1368_v27  ;;  %v1274_v27 = vor.u32 %v1421_v22, %v1273_v21  ;;  %v1278_v29 = vor.u32 %v1420_v25, %v1275_v26  ;;  %v1438_v21 = vld [vmem:[#allocation7 + $0x70] sm:$0xff]  ;;  %v1436_v25 = vld [vmem:[#allocation7 + $0x60] sm:$0xff] }
  0x2b   :  { %554 = vmatpush.bf16.msra.mxu3 %v1376_v30  ;;  %v1265_v30 = vld [vmem:[#allocation5 + $0x50] sm:$0xf]  ;;  %v1428_v26 = vld [vmem:[#allocation7 + $0x20] sm:$0xff] }
  0x2c   :  { %516 = vmatpush.bf16.msra.mxu0 %v1351_v32  ;;  %v1418_v32 = vld [vmem:[#allocation5 + $0x54] sm:$0xf] }
  0x2d   :  { %529 = vmatpush.bf16.msra.mxu1 %v1359_v33  ;;  %v1267_v33 = vld [vmem:[#allocation5 + $0x58] sm:$0xf0]  ;;  %v1430_v22 = vld [vmem:[#allocation7 + $0x30] sm:$0xff] }
  0x2e   :  { %542 = vmatpush.bf16.msra.mxu2 %v1367_v36  ;;  %v1270_v36 = vor.u32 %v1418_v32, %v1267_v33 }
  0x2f   :  { %517 = vmatmul.bf16.vlgmr.msra.gmra.mxu0 %v198_v38  ;;  %555 = vmatpush.bf16.msra.mxu3 %v1375_v41  ;;  %v1417_v38 = vld [vmem:[#allocation5 + $0x44] sm:$0xf0]  ;;  %v1259_v41 = vld [vmem:[#allocation5 + $0x48] sm:$0xf0] }
  0x30   :  { %561 = vmatpush.bf16.msrb.mxu0 %v1390_v34  ;;  %530 = vmatmul.bf16.vlgmr.msra.gmra.mxu1 %v199_v39  ;;  %v1266_v34 = vor.u32 %v1419_v31, %v1265_v30  ;;  %v1449_v30 = vld [vmem:[%s1675_s4] ss:$0 sm:$0xff] }
  0x31   :  { %574 = vmatpush.bf16.msrb.mxu1 %v1398_v35  ;;  %543 = vmatmul.bf16.vlgmr.msra.gmra.mxu2 %v200_v45  ;;  %v1262_v45 = vor.u32 %v1416_v40, %v1259_v41  ;;  %v1424_v40 = vld [vmem:[#allocation7] sm:$0xff]  ;;  %v701_v41 = vld [vmem:[%s1677_s6] sm:$0x3]  ;;  %s1560_s6 = smov [#allocation8]  }
  0x32   :  { %594 = vmatpush.bf16.msrb.mxu2 %v1399_v42  ;;  %556 = vmatmul.bf16.vlgmr.msra.gmra.mxu3 %v201_v46  ;;  %v1249_v46 = vld [vmem:[#allocation5 + $0x30] sm:$0xf]  ;;  %s981_s29 = sshll.u32 %s1560_s6, 4  ;;  %s982_s29 = int_to_ptr.vmem [resolvable:$true] %s981_s29 }
  0x33   :  { %670 = vmatpush.bf16.msrb.mxu3 %v1407_v3 }
  0x34   :  { %562 = vmatpush.bf16.msrb.mxu0 %v1389_v43  ;;  %v1258_v43 = vor.u32 %v1417_v38, %v1257_v37  ;;  %v1426_v37 = vld [vmem:[#allocation7 + $0x10] sm:$0xff]  ;;  %v1432_v38 = vld [vmem:[#allocation7 + $0x40] sm:$0xff] }
  0x35   :  { %575 = vmatpush.bf16.msrb.mxu1 %v1397_v44 }
  0x36   :  { %787 = vmatpush.bf16.msra.mxu2 %v1282_v19  ;;  %v1439_v19 = vld [vmem:[#allocation7 + $0x78] sm:$0xff] }
  0x37   :  { %671 = vmatpush.bf16.msrb.mxu3 %v1406_v4 }
  0x38   :  { %563 = vmatpush.bf16.msrb.mxu0 %v1388_v47  ;;  %v1415_v47 = vld [vmem:[#allocation5 + $0x34] sm:$0xf0] }
  0x39   :  { %576 = vmatpush.bf16.msrb.mxu1 %v1396_v48  ;;  %v1414_v48 = vld [vmem:[#allocation5 + $0x34] sm:$0xf] }
  0x3a   :  { %788 = vmatpush.bf16.msra.mxu2 %v1274_v27  ;;  %v1435_v27 = vld [vmem:[#allocation7 + $0x58] sm:$0xff] }
  0x3b   :  { %672 = vmatpush.bf16.msrb.mxu3 %v1405_v5 }
  0x3c   :  { %564 = vmatpush.bf16.msrb.mxu0 %v1387_v49  ;;  %v1251_v49 = vld [vmem:[#allocation5 + $0x38] sm:$0xf0] }
  0x3d   :  { %577 = vmatpush.bf16.msrb.mxu1 %v1395_v50  ;;  %v1250_v50 = vor.u32 %v1415_v47, %v1249_v46  ;;  %v703_v46 = vperm.slane %v701_v41, 0 }
  0x3e   :  { %789 = vmatpush.bf16.msra.mxu2 %v1266_v34 }
  0x3f   :  { %673 = vmatpush.bf16.msrb.mxu3 %v1404_v6 }
  0x40   :  { %565 = vmatpush.bf16.msrb.mxu0 %v1386_v52  ;;  %v1254_v52 = vor.u32 %v1414_v48, %v1251_v49 }
  0x41   :  { %578 = vmatpush.bf16.msrb.mxu1 %v1394_v53  ;;  %1190 = vmatmul.msk.bf16.vlgmr.msrb.gmra.mxu2 %vm505_vm0, %v204_v57  ;;  %v1241_v53 = vld [vmem:[#allocation5 + $0x20] sm:$0xf]  ;;  %v1243_v57 = vld [vmem:[#allocation5 + $0x28] sm:$0xf0] }
  0x42   :  { %790 = vmatpush.bf16.msra.mxu2 %v1258_v43 }
  0x43   :  { %674 = vmatpush.bf16.msrb.mxu3 %v1403_v7  ;;  %v1233_v7 = vld [vmem:[#allocation5 + $0x10] sm:$0xf] }
  0x44   :  { %566 = vmatpush.bf16.msrb.mxu0 %v1385_v55 }
  0x45   :  { %579 = vmatpush.bf16.msrb.mxu1 %v1393_v56  ;;  %v1412_v56 = vld [vmem:[#allocation5 + $0x24] sm:$0xf] }
  0x46   :  { %791 = vmatpush.bf16.msra.mxu2 %v1250_v50  ;;  %v1246_v60 = vor.u32 %v1412_v56, %v1243_v57 }
  0x47   :  { %675 = vmatpush.bf16.msrb.mxu3 %v1402_v8  ;;  %v1411_v8 = vld [vmem:[#allocation5 + $0x14] sm:$0xf0] }
  0x48   :  { %567 = vmatpush.bf16.msrb.mxu0 %v1384_v58  ;;  %v1242_v58 = vor.u32 %v1413_v54, %v1241_v53  ;;  %v1450_v54 = vld [vmem:[%s1679_s8] ss:$0 sm:$0xff] }
  0x49   :  { %580 = vmatpush.bf16.msrb.mxu1 %v1392_v59 }
  0x4a   :  { %792 = vmatpush.bf16.msra.mxu2 %v1242_v58 }
  0x4b   :  { %676 = vmatpush.bf16.msrb.mxu3 %v1401_v9  ;;  %v1410_v9 = vld [vmem:[#allocation5 + $0x14] sm:$0xf] }
  0x4c   :  { %568 = vmatpush.bf16.msrb.mxu0 %v1383_v63 }
  0x4d   :  { %581 = vmatpush.bf16.msrb.mxu1 %v1391_v0 }
  0x4f   :  { %569 = vmatmul.bf16.vlgmr.msrb.gmra.mxu0 %v202_v1  ;;  %677 = vmatpush.bf16.msrb.mxu3 %v1400_v12 }
  0x50   :  { %582 = vmatmul.bf16.vlgmr.msrb.gmra.mxu1 %v203_v2  ;;  %800 = vmatpush.bf16.msra.mxu0 %v1286_v24  ;;  %v1429_v24 = vld [vmem:[#allocation7 + $0x28] sm:$0xff] }
  0x51   :  { %949 = vmatpush.bf16.msra.mxu1 %v1431_v20 }
  0x53   :  { %962 = vmatpush.bf16.msra.mxu3 %v1439_v19 }
  0x54   :  { %801 = vmatpush.bf16.msra.mxu0 %v1278_v29  ;;  %v1434_v29 = vld [vmem:[#allocation7 + $0x50] sm:$0xff] }
  0x55   :  { %950 = vmatpush.bf16.msra.mxu1 %v1430_v22 }
  0x57   :  { %963 = vmatpush.bf16.msra.mxu3 %v1438_v21 }
  0x58   :  { %802 = vmatpush.bf16.msra.mxu0 %v1270_v36  ;;  %v1433_v36 = vld [vmem:[#allocation7 + $0x48] sm:$0xff] }
  0x59   :  { %951 = vmatpush.bf16.msra.mxu1 %v1429_v24 }
  0x5c   :  { %803 = vmatpush.bf16.msra.mxu0 %v1262_v45 }
  0x5d   :  { %952 = vmatpush.bf16.msra.mxu1 %v1428_v26 }
  0x60   :  { %804 = vmatpush.bf16.msra.mxu0 %v1254_v52 }
  0x64   :  { %805 = vmatpush.bf16.msra.mxu0 %v1246_v60 }
  0xac   :  { %v518_v10 = vpop.f32.mrf.mxu0 }
  0xad   :  { %v531_v11 = vpop.f32.mrf.mxu1  ;;  %v519_v35 = vadd.f32 %v1448_v28, %v518_v10  ;;  %v1234_v10 = vor.u32 %v1411_v8, %v1233_v7  ;;  %v1427_v28 = vld [vmem:[#allocation7 + $0x18] sm:$0xff] }
  0xae   :  { %953 = vmatpush.bf16.msra.mxu1 %v1427_v28 }
  0xaf   :  { %v532_v44 = vadd.f32 %v531_v11, %v519_v35  ;;  %v1235_v11 = vld [vmem:[#allocation5 + $0x18] sm:$0xf0]  ;;  %793 = vmatpush.bf16.msra.mxu2 %v1234_v10 }
  0xb0   :  { %v1238_v12 = vor.u32 %v1410_v9, %v1235_v11 }
  0xb2   :  { %806 = vmatpush.bf16.msra.mxu0 %v1238_v12  ;;  %954 = vmatpush.bf16.msra.mxu1 %v1426_v37 }
  0xb4   :  { %v520_v13 = vpop.f32.mrf.mxu0  ;;  %v544_v18 = vpop.f32.mrf.mxu2 }
  0xb5   :  { %v533_v14 = vpop.f32.mrf.mxu1  ;;  %v557_v23 = vpop.f32.mrf.mxu3  ;;  %v545_v51 = vadd.f32 %v544_v18, %v532_v44  ;;  %v1225_v13 = vld [vmem:[#allocation5] sm:$0xf]  ;;  %v1230_v18 = vor.u32 %v1408_v15, %v1227_v17 }
  0xb6   :  { %v1409_v14 = vld [vmem:[#allocation5 + $0x4] sm:$0xf0] }
  0xb7   :  { %v558_v59 = vadd.f32 %v557_v23, %v545_v51  ;;  %v1226_v16 = vor.u32 %v1409_v14, %v1225_v13  ;;  %807 = vmatpush.bf16.msra.mxu0 %v1230_v18  ;;  %v1437_v23 = vld [vmem:[#allocation7 + $0x68] sm:$0xff] }
  0xb8   :  { %964 = vmatpush.bf16.msra.mxu3 %v1437_v23 }
  0xb9   :  { %794 = vmatpush.bf16.msra.mxu2 %v1226_v16 }
  0xbc   :  { %v546_v39 = vpop.f32.mrf.mxu2  ;;  %965 = vmatpush.bf16.msra.mxu3 %v1436_v25 }
  0xbd   :  { %v559_v42 = vpop.f32.mrf.mxu3  ;;  %v1425_v39 = vld [vmem:[#allocation7 + $0x8] sm:$0xff] }
  0xbe   :  { %955 = vmatpush.bf16.msra.mxu1 %v1425_v39  ;;  %v704_v42 = vperm.slane %v701_v41, 1 }
  0xc0   :  { %966 = vmatpush.bf16.msra.mxu3 %v1435_v27 }
  0xc2   :  { %956 = vmatpush.bf16.msra.mxu1 %v1424_v40 }
  0xc4   :  { %v596_v55 = vpop.f32.mrf.mxu2  ;;  %967 = vmatpush.bf16.msra.mxu3 %v1434_v29 }
  0xc8   :  { %968 = vmatpush.bf16.msra.mxu3 %v1433_v36 }
  0xcc   :  { %v570_v61 = vpop.f32.mrf.mxu0  ;;  %v598_v1 = vpop.f32.mrf.mxu2  ;;  %969 = vmatpush.bf16.msra.mxu3 %v1432_v38 }
  0xcd   :  { %v583_v62 = vpop.f32.mrf.mxu1  ;;  %v571_v63 = vadd.f32 %v570_v61, %v558_v59 }
  0xcf   :  { %v584_v0 = vadd.f32 %v583_v62, %v571_v63 }
  0xd1   :  { %v597_v2 = vadd.f32 %v596_v55, %v584_v0 }
  0xd3   :  { %v600_v3 = vmax.f32 %v597_v2, 0.0 }
  0xd4   :  { %v572_v4 = vpop.f32.mrf.mxu0 }
  0xd5   :  { %v585_v5 = vpop.f32.mrf.mxu1  ;;  %v601_v6 = vpack.c.bf16 %v600_v3, %v600_v3 }
  0xd7   :  { %678 = vmatmul.bf16.vlgmr.msrb.gmra.mxu3 %v601_v6 }
 0x15a   :  { %v679_v31 = vpop.f32.mrf.mxu3 }
 0x15b   :  { %v680_v32 = vadd.f32 %v1449_v30, %v679_v31 }
 0x15d   :  { %v683_v33 = vmax.f32 %v680_v32, 0.0 }
 0x15f   :  { %v684_v34 = vpack.c.bf16 %v683_v33, %v683_v33 }
 0x161   :  { %795 = vmatmul.bf16.vlgmr.msra.gmra.mxu2 %v684_v34  ;;  %808 = vmatmul.bf16.vlgmr.msra.gmra.mxu0 %v684_v34 }
 0x162   :  { %v681_v35 = vpop.f32.mrf.mxu3 }
 0x1de   :  { %v809_v43 = vpop.f32.mrf.mxu0 }
 0x1df   :  { %v810_v44 = vadd.f32 %v809_v43, %v704_v42 }
 0x1e1   :  { %v814_v45 = vmax.f32 %v810_v44, 0.0 }
 0x1e3   :  { %v816_v47 = vpack.c.bf16 %v814_v45, %v814_v45 }
 0x1e4   :  { %v796_v48 = vpop.f32.mrf.mxu2 }
 0x1e5   :  { %v797_v49 = vadd.f32 %v796_v48, %v703_v46  ;;  %970 = vmatmul.bf16.vlgmr.msra.gmra.mxu3 %v816_v47 }
 0x1e6   :  { %v811_v50 = vpop.f32.mrf.mxu0 }
 0x1e7   :  { %v813_v51 = vmax.f32 %v797_v49, 0.0 }
 0x1e9   :  { %v815_v52 = vpack.c.bf16 %v813_v51, %v813_v51 }
 0x1eb   :  { %957 = vmatmul.bf16.vlgmr.msra.gmra.mxu1 %v815_v52 }
 0x1ec   :  { %v798_v53 = vpop.f32.mrf.mxu2 }
 0x268   :  { %v958_v55 = vpop.f32.mrf.mxu1  ;;  %v971_v56 = vpop.f32.mrf.mxu3 }
 0x269   :  { %v959_v57 = vadd.f32 %v1450_v54, %v958_v55 }
 0x26b   :  { %v972_v58 = vadd.f32 %v971_v56, %v959_v57 }
 0x26d   :  { %975 = vst [vmem:[#allocation8] sm:$0xff] %v972_v58 }
 0x26e   :  { %986 = dma.vmem_to_hbm [thread:$0]  %s982_s29, 128, %s984_s11, [#allocation4]  }
 0x270   :  { %v960_v59 = vpop.f32.mrf.mxu1  ;;  %v973_v60 = vpop.f32.mrf.mxu3 }
 0x271   :  { %1551 = dma.done.wait [#allocation4], 128  }
 0x272   :  { %1552 = vsyncadd [#allocation4], 4294967168 }
 0x273   :  { %991 = vsyncpa [#allocation3], 1 }
 0x274   :  { %992 = vsyncpa [#allocation6], 1 }
 0x275   :  { %993 = vsyncpa [#allocation4], 1 }

</bundles_post_ra>
